<compile_context>
chip_gen: v7x
topology: tpu7x:2x2x1
jax: 0.10.0
libtpu: 0.0.40
codegen_flags: <defaults>
</compile_context>

<pallas_src>
import functools

import jax
import jax.numpy as jnp
from jax.experimental import pallas as pl
from jax.experimental.pallas import tpu as pltpu


def _ffn_kernel(x_ref, w1_ref, b1_ref, w2_ref, b2_ref, o_ref, acc_ref):
    """One (row-tile, hidden-chunk) step of y = relu(x@W1 + b1) @ W2 + b2."""
    f = pl.program_id(1)

    @pl.when(f == 0)
    def _init():
        acc_ref[...] = jnp.zeros_like(acc_ref)

    # In-kernel cast of the input tile to the MXU compute dtype (no-op for
    # f32 compute); the VPU cast hides under the matmuls.
    x = x_ref[...].astype(w1_ref.dtype)                                # (tm, D)
    h = jnp.dot(x, w1_ref[...], preferred_element_type=jnp.float32)    # (tm, tf)
    h = jnp.maximum(h + b1_ref[...], 0.0)                              # f32 bias + ReLU
    h = h.astype(w2_ref.dtype)                                         # single downcast
    acc_ref[...] += jnp.dot(h, w2_ref[...], preferred_element_type=jnp.float32)

    @pl.when(f == pl.num_programs(1) - 1)
    def _store():
        o_ref[...] = (acc_ref[...] + b2_ref[...]).astype(o_ref.dtype)


def _round_up(x: int, m: int) -> int:
    return pl.cdiv(x, m) * m


def _vmem_bytes(tm, tf, nf, D, xbytes, obytes, cbytes):
    """Rough per-kernel VMEM footprint for a (tm, tf) tiling choice."""
    wbuf = 1 if nf == 1 else 2            # resident weights: single-buffered
    return int(
        2 * tm * D * xbytes               # input row tiles (double-buffered)
        + 2 * tm * D * obytes             # output tiles (double-buffered)
        + tm * D * 4                      # f32 accumulator scratch
        + wbuf * 2 * D * tf * cbytes      # W1 / W2 chunk(s)
        + wbuf * tf * 4 + 2 * D * 4       # biases (f32)
        + tm * D * cbytes                 # in-kernel cast of x
        + tm * tf * (4 + cbytes))         # hidden intermediate (f32 + compute)


@functools.partial(
    jax.jit,
    static_argnames=("tm", "compute_dtype", "out_dtype", "single_buffer_weights"))
def position_wise_ffn(values, w1, b1, w2, b2, *, tm=512,
                      compute_dtype=jnp.bfloat16, out_dtype=None,
                      single_buffer_weights=True):
    """values: (B, S, D) -> (B, S, D).  w1: (D, F), b1: (F,), w2: (F, D), b2: (D,)."""
    B, S, D = values.shape
    F = w1.shape[1]
    M = B * S
    out_dtype = values.dtype if out_dtype is None else out_dtype

    xbytes = jnp.dtype(values.dtype).itemsize
    cbytes = jnp.dtype(compute_dtype).itemsize
    obytes = jnp.dtype(out_dtype).itemsize

    # ---- generation-aware VMEM budget --------------------------------------
    try:
        vmem_cap = int(pltpu.get_tpu_info().vmem_capacity_bytes)
    except Exception:  # hardware query unavailable -> conservative (v7x) value
        vmem_cap = 64 << 20
    budget = int(0.70 * vmem_cap)

    # ---- row tile candidates ------------------------------------------------
    # Large & 256-aligned (v6e/v7x MXU), but (a) never larger than the
    # 8-aligned row count (tiny inputs) and (b) small enough that the row grid
    # has >= 2 steps when M is big, so "parallel" shards across v7x's 2 TCs.
    tm_eff = min(tm, _round_up(pl.cdiv(M, 2), 256), _round_up(M, 8))
    tm_eff = max(tm_eff, 8)
    tm_cands = []
    t = tm_eff
    while True:
        tm_cands.append(t)
        if t <= 256:
            break
        nxt = max(256, _round_up(t // 2, 256))
        if nxt >= t:
            break
        t = nxt

    # ---- hidden-dim tile candidates -----------------------------------------
    # Prefer fully-resident weights (streamed from HBM exactly once); fall back
    # to F-tiling only when D*F weights + the tm*F hidden intermediate do not
    # fit the budget (e.g. production dim_ffn on v7x's 64 MiB VMEM).
    tf_cands = [F]
    for cand in (4096, 2048, 1024, 512, 256, 128):
        if cand < F and F % cand == 0:
            tf_cands.append(cand)

    tm_sel, tf_sel = tm_cands[-1], tf_cands[-1]     # best-effort fallback
    found = False
    for tf_c in tf_cands:                            # resident weights first
        nf_c = pl.cdiv(F, tf_c)
        for tm_c in tm_cands:                        # then largest row tile
            if _vmem_bytes(tm_c, tf_c, nf_c, D, xbytes, obytes, cbytes) <= budget:
                tm_sel, tf_sel, found = tm_c, tf_c, True
                break
        if found:
            break

    nf = pl.cdiv(F, tf_sel)
    nm = pl.cdiv(M, tm_sel)

    est = _vmem_bytes(tm_sel, tf_sel, nf, D, xbytes, obytes, cbytes)
    vmem_limit = int(min(max(2 * est, 32 << 20), int(0.9 * vmem_cap)))

    # ---- operands ------------------------------------------------------------
    # No pad and NO host-side cast of x (cast happens in-kernel); weight/bias
    # casts stay in the wrapper so they are not redone every grid step.
    x2d = values.reshape(M, D)
    w1c = w1.astype(compute_dtype)
    w2c = w2.astype(compute_dtype)
    b1_2d = b1.reshape(1, F).astype(jnp.float32)
    b2_2d = b2.reshape(1, D).astype(jnp.float32)

    def invariant_spec(shape, index_map):
        # Grid-invariant operand: a single VMEM buffer is enough.
        if single_buffer_weights:
            return pl.BlockSpec(shape, index_map, pipeline_mode=pl.Buffered(1))
        return pl.BlockSpec(shape, index_map)

    if nf == 1:
        w1_spec = invariant_spec((D, tf_sel), lambda i, f: (0, 0))
        b1_spec = invariant_spec((1, tf_sel), lambda i, f: (0, 0))
        w2_spec = invariant_spec((tf_sel, D), lambda i, f: (0, 0))
    else:
        # Streamed hidden-dim chunks (double-buffered by default).
        w1_spec = pl.BlockSpec((D, tf_sel), lambda i, f: (0, f))
        b1_spec = pl.BlockSpec((1, tf_sel), lambda i, f: (0, f))
        w2_spec = pl.BlockSpec((tf_sel, D), lambda i, f: (f, 0))
    b2_spec = invariant_spec((1, D), lambda i, f: (0, 0))

    cost = pl.CostEstimate(
        flops=4 * M * D * F,                      # two (M,D)x(D/F) matmuls
        transcendentals=0,
        bytes_accessed=int(M * D * (xbytes + obytes)
                           + 2 * D * F * cbytes + (F + D) * 4))

    out2d = pl.pallas_call(
        _ffn_kernel,
        out_shape=jax.ShapeDtypeStruct((M, D), out_dtype),
        grid_spec=pltpu.PrefetchScalarGridSpec(
            num_scalar_prefetch=0,
            grid=(nm, nf),                         # reduction (F) axis last
            in_specs=[
                pl.BlockSpec((tm_sel, D), lambda i, f: (i, 0)),   # x row tile
                w1_spec, b1_spec, w2_spec, b2_spec,
            ],
            out_specs=pl.BlockSpec((tm_sel, D), lambda i, f: (i, 0)),
            scratch_shapes=[pltpu.VMEM((tm_sel, D), jnp.float32)],
        ),
        compiler_params=pltpu.CompilerParams(
            dimension_semantics=("parallel", "arbitrary"),
            vmem_limit_bytes=vmem_limit),
        cost_estimate=cost,
    )(x2d, w1c, b1_2d, w2c, b2_2d)

    return out2d.reshape(B, S, D)


def run_ffn(values, w1, b1, w2, b2, **kwargs):
    """Call the fused kernel.  Only a pipeline_mode / pl.Buffered API mismatch
    (TypeError or Mosaic lowering rejection) falls back to default
    double-buffered weight specs; real compile / VMEM-OOM errors propagate."""
    try:
        return position_wise_ffn(values, w1, b1, w2, b2, **kwargs)
    except (TypeError, pltpu.LoweringException):  # pragma: no cover
        kwargs = dict(kwargs)
        kwargs["single_buffer_weights"] = False
        return position_wise_ffn(values, w1, b1, w2, b2, **kwargs)


def init_params(key, dim_model, dim_ffn, dtype=jnp.float32):
    """nn.Linear-style init (uniform +/- 1/sqrt(fan_in)); weights stored
    pre-transposed as (in_dim, out_dim) so the kernel computes x @ W
    (equivalent to PyTorch's x @ W.T with W of shape (out, in))."""
    k1, k2, k3, k4 = jax.random.split(key, 4)
    bound1 = 1.0 / (dim_model ** 0.5)
    bound2 = 1.0 / (dim_ffn ** 0.5)
    w1 = jax.random.uniform(k1, (dim_model, dim_ffn), dtype, -bound1, bound1)
    b1 = jax.random.uniform(k2, (dim_ffn,), dtype, -bound1, bound1)
    w2 = jax.random.uniform(k3, (dim_ffn, dim_model), dtype, -bound2, bound2)
    b2 = jax.random.uniform(k4, (dim_model,), dtype, -bound2, bound2)
    return w1, b1, w2, b2


if __name__ == "__main__":
    batch, seq, dim_model, dim_ffn = 2, 8, 32, 64

    key = jax.random.PRNGKey(0)
    k_x, k_p = jax.random.split(key)
    x = jax.random.normal(k_x, (batch, seq, dim_model), dtype=jnp.float32)
    w1, b1, w2, b2 = init_params(k_p, dim_model, dim_ffn)

    ref = jnp.maximum(x @ w1 + b1, 0.0) @ w2 + b2

    # Default bf16-MXU path (f32 accumulate): loose tolerance vs f32 ref.
    out = jax.block_until_ready(run_ffn(x, w1, b1, w2, b2))
    assert out.shape == x.shape and out.dtype == x.dtype
    assert jnp.allclose(out, ref, atol=2e-2, rtol=2e-2)

    # f32 compute path: correctness/debug path only, tight tolerance.
    out_f32 = jax.block_until_ready(
        run_ffn(x, w1, b1, w2, b2, compute_dtype=jnp.float32))
    assert jnp.allclose(out_f32, ref, atol=1e-5, rtol=1e-5)

    # bf16 output option (halves writeback on mem-bound v5e / VMEM on v7x).
    out_bf16 = jax.block_until_ready(
        run_ffn(x, w1, b1, w2, b2, out_dtype=jnp.bfloat16))
    assert out_bf16.dtype == jnp.bfloat16
    assert jnp.allclose(out_bf16.astype(jnp.float32), ref, atol=3e-2, rtol=3e-2)

    # Ragged row count (batch*seq not a multiple of 8 or the tile) exercises
    # the masked partial boundary tile that replaced host-side zero-padding.
    x_odd = jax.random.normal(jax.random.PRNGKey(1), (2, 7, dim_model),
                              dtype=jnp.float32)
    ref_odd = jnp.maximum(x_odd @ w1 + b1, 0.0) @ w2 + b2
    out_odd = jax.block_until_ready(run_ffn(x_odd, w1, b1, w2, b2))
    assert out_odd.shape == x_odd.shape
    assert jnp.allclose(out_odd, ref_odd, atol=2e-2, rtol=2e-2)

    print("KERNEL_OK")
</pallas_src>

<mosaic_0001>
module attributes {stable_mosaic.version = 11 : i64} {
  func.func @_ffn_kernel(%arg0: i32, %arg1: i32, %arg2: memref<16x32xf32, #tpu.memory_space<vmem>>, %arg3: memref<32x64xbf16, #tpu.memory_space<vmem>>, %arg4: memref<1x64xf32, #tpu.memory_space<vmem>>, %arg5: memref<64x32xbf16, #tpu.memory_space<vmem>>, %arg6: memref<1x32xf32, #tpu.memory_space<vmem>>, %arg7: memref<16x32xf32, #tpu.memory_space<vmem>>, %arg8: memref<16x32xf32, #tpu.memory_space<vmem>>) attributes {dimension_semantics = [#tpu.dimension_semantics<parallel>, #tpu.dimension_semantics<arbitrary>], iteration_bounds = array<i64: 1, 1>, scalar_prefetch = 0 : i64, scratch_operands = 1 : i64, tpu.core_type = #tpu.core_type<tc>, window_params = [{transform_indices = @transform_0, window_bounds = array<i64: 16, 32>}, {pipeline_mode = #tpu.pipeline_mode<synchronous>, transform_indices = @transform_1, window_bounds = array<i64: 32, 64>}, {pipeline_mode = #tpu.pipeline_mode<synchronous>, transform_indices = @transform_2, window_bounds = array<i64: 1, 64>}, {pipeline_mode = #tpu.pipeline_mode<synchronous>, transform_indices = @transform_3, window_bounds = array<i64: 64, 32>}, {pipeline_mode = #tpu.pipeline_mode<synchronous>, transform_indices = @transform_4, window_bounds = array<i64: 1, 32>}, {transform_indices = @transform_5, window_bounds = array<i64: 16, 32>}]} {
    %c0_i32 = arith.constant 0 : i32
    %0 = arith.cmpi eq, %arg1, %c0_i32 : i32
    %1 = arith.extui %0 : i1 to i32
    %c0_i32_0 = arith.constant 0 : i32
    %2 = arith.cmpi ne, %1, %c0_i32_0 : i32
    scf.if %2 {
      %cst_16 = arith.constant 0.000000e+00 : f32
      %21 = vector.broadcast %cst_16 : f32 to vector<16x32xf32>
      %c0_17 = arith.constant 0 : index
      %c0_18 = arith.constant 0 : index
      %22 = vector.load %arg8[%c0_17, %c0_18] : memref<16x32xf32, #tpu.memory_space<vmem>>, vector<16x32xf32>
      tpu.vector_store %arg8[%c0_17, %c0_18], %21 {strides = array<i32>} : memref<16x32xf32, #tpu.memory_space<vmem>>, vector<16x32xf32>,
    } else {
    }
    %c0 = arith.constant 0 : index
    %c0_1 = arith.constant 0 : index
    %3 = vector.load %arg2[%c0, %c0_1] : memref<16x32xf32, #tpu.memory_space<vmem>>, vector<16x32xf32>
    %4 = arith.truncf %3 : vector<16x32xf32> to vector<16x32xbf16>
    %c0_2 = arith.constant 0 : index
    %c0_3 = arith.constant 0 : index
    %5 = vector.load %arg3[%c0_2, %c0_3] : memref<32x64xbf16, #tpu.memory_space<vmem>>, vector<32x64xbf16>
    %cst = arith.constant dense<0.000000e+00> : vector<16x64xf32>
    %6 = tpu.matmul %4, %5, %cst {dimension_numbers = #tpu.dot_dimension_numbers<[1], [0], [0], [1], [0, 0, 1, 1], [], []>} : vector<16x32xbf16>, vector<32x64xbf16>, vector<16x64xf32> -> vector<16x64xf32>
    %c0_4 = arith.constant 0 : index
    %c0_5 = arith.constant 0 : index
    %7 = vector.load %arg4[%c0_4, %c0_5] : memref<1x64xf32, #tpu.memory_space<vmem>>, vector<1x64xf32>
    %8 = vector.broadcast %7 : vector<1x64xf32> to vector<16x64xf32>
    %9 = arith.addf %6, %8 : vector<16x64xf32>
    %cst_6 = arith.constant 0.000000e+00 : f32
    %10 = vector.broadcast %cst_6 : f32 to vector<16x64xf32>
    %11 = arith.maximumf %9, %10 : vector<16x64xf32>
    %12 = arith.truncf %11 : vector<16x64xf32> to vector<16x64xbf16>
    %c0_7 = arith.constant 0 : index
    %c0_8 = arith.constant 0 : index
    %13 = vector.load %arg8[%c0_7, %c0_8] : memref<16x32xf32, #tpu.memory_space<vmem>>, vector<16x32xf32>
    %c0_9 = arith.constant 0 : index
    %c0_10 = arith.constant 0 : index
    %14 = vector.load %arg5[%c0_9, %c0_10] : memref<64x32xbf16, #tpu.memory_space<vmem>>, vector<64x32xbf16>
    %cst_11 = arith.constant dense<0.000000e+00> : vector<16x32xf32>
    %15 = tpu.matmul %12, %14, %cst_11 {dimension_numbers = #tpu.dot_dimension_numbers<[1], [0], [0], [1], [0, 0, 1, 1], [], []>} : vector<16x64xbf16>, vector<64x32xbf16>, vector<16x32xf32> -> vector<16x32xf32>
    %16 = arith.addf %13, %15 : vector<16x32xf32>
    %c0_12 = arith.constant 0 : index
    %c0_13 = arith.constant 0 : index
    %17 = vector.load %arg8[%c0_12, %c0_13] : memref<16x32xf32, #tpu.memory_space<vmem>>, vector<16x32xf32>
    tpu.vector_store %arg8[%c0_12, %c0_13], %16 {strides = array<i32>} : memref<16x32xf32, #tpu.memory_space<vmem>>, vector<16x32xf32>,
    %c0_i32_14 = arith.constant 0 : i32
    %18 = arith.cmpi eq, %arg1, %c0_i32_14 : i32
    %19 = arith.extui %18 : i1 to i32
    %c0_i32_15 = arith.constant 0 : i32
    %20 = arith.cmpi ne, %19, %c0_i32_15 : i32
    scf.if %20 {
      %c0_16 = arith.constant 0 : index
      %c0_17 = arith.constant 0 : index
      %21 = vector.load %arg8[%c0_16, %c0_17] : memref<16x32xf32, #tpu.memory_space<vmem>>, vector<16x32xf32>
      %c0_18 = arith.constant 0 : index
      %c0_19 = arith.constant 0 : index
      %22 = vector.load %arg6[%c0_18, %c0_19] : memref<1x32xf32, #tpu.memory_space<vmem>>, vector<1x32xf32>
      %23 = vector.broadcast %22 : vector<1x32xf32> to vector<16x32xf32>
      %24 = arith.addf %21, %23 : vector<16x32xf32>
      %c0_20 = arith.constant 0 : index
      %c0_21 = arith.constant 0 : index
      %25 = vector.load %arg7[%c0_20, %c0_21] : memref<16x32xf32, #tpu.memory_space<vmem>>, vector<16x32xf32>
      tpu.vector_store %arg7[%c0_20, %c0_21], %24 {strides = array<i32>} : memref<16x32xf32, #tpu.memory_space<vmem>>, vector<16x32xf32>,
    } else {
    }
    return
  }
  func.func @transform_0(%arg0: i32, %arg1: i32) -> (i32, i32) {
    %c0_i32 = arith.constant 0 : i32
    %c0_i32_0 = arith.constant 0 : i32
    return %arg0, %c0_i32 : i32, i32
  }
  func.func @transform_1(%arg0: i32, %arg1: i32) -> (i32, i32) {
    %c0_i32 = arith.constant 0 : i32
    %c0_i32_0 = arith.constant 0 : i32
    %c0_i32_1 = arith.constant 0 : i32
    return %c0_i32, %c0_i32_0 : i32, i32
  }
  func.func @transform_2(%arg0: i32, %arg1: i32) -> (i32, i32) {
    %c0_i32 = arith.constant 0 : i32
    %c0_i32_0 = arith.constant 0 : i32
    %c0_i32_1 = arith.constant 0 : i32
    return %c0_i32, %c0_i32_0 : i32, i32
  }
  func.func @transform_3(%arg0: i32, %arg1: i32) -> (i32, i32) {
    %c0_i32 = arith.constant 0 : i32
    %c0_i32_0 = arith.constant 0 : i32
    %c0_i32_1 = arith.constant 0 : i32
    return %c0_i32, %c0_i32_0 : i32, i32
  }
  func.func @transform_4(%arg0: i32, %arg1: i32) -> (i32, i32) {
    %c0_i32 = arith.constant 0 : i32
    %c0_i32_0 = arith.constant 0 : i32
    %c0_i32_1 = arith.constant 0 : i32
    return %c0_i32, %c0_i32_0 : i32, i32
  }
  func.func @transform_5(%arg0: i32, %arg1: i32) -> (i32, i32) {
    %c0_i32 = arith.constant 0 : i32
    %c0_i32_0 = arith.constant 0 : i32
    return %arg0, %c0_i32 : i32, i32
  }
}

</mosaic_0001>

<bundles_post_ra>
// kernel: position_wise_ffn.1
= control target key start
LH: loop header
LB: loop body
LE: loop exit
PB: predicated region body
PF: predicated region fallthrough
CT: control target
= control target key end

     0   :  { %v291_v1 = vmov 0.0   ;;  %vm292_vm0 = vmmov 0   ;;  %vm26_vm1 = vcmask 261120   ;;  %s375_s0 = inlined_call_operand.vmem [shape: f32[16,32], index: 0, kind: input, shape index: {}]   ;;  %s376_s1 = inlined_call_operand.vmem [shape: bf16[32,64], index: 1, kind: input, shape index: {}]   ;;  %s377_s2 = inlined_call_operand.vmem [shape: f32[1,64], index: 2, kind: input, shape index: {}]   ;;  %s378_s3 = inlined_call_operand.vmem [shape: bf16[64,32], index: 3, kind: input, shape index: {}]   ;;  %s379_s4 = inlined_call_operand.vmem [shape: f32[1,32], index: 4, kind: input, shape index: {}]   ;;  %s380_s5 = inlined_call_operand.hbm [shape: f32[16,32], index: 5, kind: output, shape index: {}]  }
   0x1   :  { %v261_v0 = vld [vmem:[%s376_s1] sm:$0xff]   ;;  %236 = vmatprep.subr.bf16.mxu0 %v291_v1  ;;  %v262_v2 = vld [vmem:[%s376_s1 + $0x8] sm:$0xff]   ;;  %244 = vmatprep.subr.bf16.mxu1 %v291_v1  ;;  %27 = vst.msk [vmem:[#allocation2] sm:$0xff] %vm26_vm1, %v291_v1  ;;  %28 = vst.msk [vmem:[#allocation2 + $0x8] sm:$0xff] %vm26_vm1, %v291_v1 }
   0x2   :  { %237 = vmatpush3.bf16.msra.mxu0 %v261_v0  ;;  %240 = vmatprep.mubr.msk.bf16.mxu0 %vm292_vm0, %v291_v1  ;;  %v29_v3 = vld [vmem:[%s375_s0] sm:$0xff]  ;;  %v30_v4 = vld [vmem:[%s375_s0 + $0x8] sm:$0xff] }
   0x3   :  { %238 = vmatprep.subr.bf16.mxu0 %v291_v1  ;;  %v263_v5 = vld [vmem:[%s378_s3] sm:$0xff]   ;;  %252 = vmatprep.mubr.msk.bf16.mxu1 %vm292_vm0, %v291_v1  ;;  %v264_v6 = vld [vmem:[%s378_s3 + $0x8] sm:$0xff]   ;;  %v31_v7 = vpack.c.bf16 %v30_v4, %v29_v3 }
   0x4   :  { %245 = vmatpush3.bf16.msra.mxu1 %v263_v5 }
   0x5   :  { %246 = vmatprep.subr.bf16.mxu1 %v291_v1 }
   0x6   :  { %239 = vmatpush3.bf16.msra.mxu0 %v262_v2 }
   0x7   :  { %10 = vsyncpa [#allocation4], 0  ;;  %v265_v8 = vld [vmem:[%s378_s3 + $0x10] sm:$0xff]   ;;  %v266_v9 = vld [vmem:[%s378_s3 + $0x18] sm:$0xff]   ;;  %vm137_vm2 = vcmask 523264   ;;  %s293_s9 = smov [#allocation3]  }
   0x8   :  { %247 = vmatpush3.bf16.msra.mxu1 %v264_v6  ;;  %v218_v10 = vld [vmem:[%s377_s2] ss:$0 sm:$0xff]  ;;  %v104_v22 = vld [vmem:[#allocation2 + $0x8] sm:$0xff]  ;;  %s207_s10 = sshll.u32 %s293_s9, 4  ;;  %s208_s10 = int_to_ptr.vmem [resolvable:$true] %s207_s10 }
   0x9   :  { %241 = vmatmul.mubr.msk.bf16.vlgmr.msra.gmra.mrb[0].mxu0 %vm26_vm1, %v31_v7  ;;  %248 = vmatprep.subr.bf16.mxu1 %v291_v1  ;;  %v103_v20 = vld [vmem:[#allocation2] sm:$0xff]  ;;  %s267_s11 = scalar_lea.vmem %s208_s10, 256  ;;  %p272_p1 = scmp.lt.s32.totalorder %s208_s10, %s208_s10 }
   0xa   :  { %v227_v28 = vld [vmem:[%s379_s4] ss:$0 sm:$0xff]  ;;  %p268_p0 = scmp.ne.s32.totalorder %s208_s10, %s267_s11  ;;  %p273_p2 = scmp.lt.s32.totalorder %s267_s11, %s267_s11 }
   0xc   :  { %249 = vmatpush3.bf16.msra.mxu1 %v265_v8  ;;  %p274_p3 = por %p273_p2, %p272_p1 }
   0xd   :  { %250 = vmatprep.subr.bf16.mxu1 %v291_v1 }
   0xe   :  { %p275_p4 = pnand %p274_p3, %p268_p0 }
  0x10   :  { %251 = vmatpush3.bf16.msra.mxu1 %v266_v9 }
  0xdc   :  { %v93_v11 = vpop.f32.mrb[0].mxu0 }
  0xdd   :  { %v94_v12 = vadd.f32 %v218_v10, %v93_v11  ;;  %v242_v13 = vpop.f32.mrb[1].mxu0 }
  0xde   :  { %v96_v14 = vpop.f32.mrb[2].mxu0 }
  0xdf   :  { %v97_v15 = vadd.f32 %v218_v10, %v96_v14  ;;  %v243_v16 = vpop.f32.mrb[3].mxu0  ;;  %v100_v17 = vmax.f32 %v94_v12, 0.0 }
  0xe1   :  { %v101_v18 = vmax.f32 %v97_v15, 0.0 }
  0xe3   :  { %v102_v19 = vpack.c.bf16 %v101_v18, %v100_v17 }
  0xe5   :  { %253 = vmatmul.mubr.msk.bf16.vlgmr.msra.gmra.mrb[0].mxu1 %vm137_vm2, %v102_v19 }
 0x1b8   :  { %v175_v21 = vpop.f32.mrb[0].mxu1 }
 0x1b9   :  { %v182_v23 = vadd.f32 %v175_v21, %v103_v20  ;;  %v254_v24 = vpop.f32.mrb[1].mxu1 }
 0x1ba   :  { %v178_v25 = vpop.f32.mrb[2].mxu1 }
 0x1bb   :  { %184 = vst.msk [vmem:[#allocation2] sm:$0xff] %vm26_vm1, %v182_v23  ;;  %v183_v26 = vadd.f32 %v178_v25, %v104_v22  ;;  %v255_v27 = vpop.f32.mrb[3].mxu1 }
 0x1bd   :  { %185 = vst.msk [vmem:[#allocation2 + $0x8] sm:$0xff] %vm26_vm1, %v183_v26 }
 0x1c2   :  { %v189_v29 = vld [vmem:[#allocation2] sm:$0xff] }
 0x1c3   :  { %v198_v30 = vadd.f32 %v227_v28, %v189_v29 }
 0x1c4   :  { %v190_v31 = vld [vmem:[#allocation2 + $0x8] sm:$0xff] }
 0x1c5   :  { %v199_v32 = vadd.f32 %v227_v28, %v190_v31  ;;  %200 = vst.msk [vmem:[#allocation3] sm:$0xff] %vm26_vm1, %v198_v30 }
 0x1c7   :  { %201 = vst.msk [vmem:[#allocation3 + $0x8] sm:$0xff] %vm26_vm1, %v199_v32 }
 0x1c8   :  { %278 = shalt.err (!%p275_p4)
}
 0x1c9   :  { %s279_s13 = scalar_lea.hbm %s380_s5, 256 }
 0x1ca   :  { %p280_p5 = scmp.ne.s32.totalorder %s380_s5, %s279_s13  ;;  %p283_p6 = scmp.lt.u32.totalorder %s279_s13, %s380_s5 }
 0x1cc   :  { %p285_p7 = pnand %p283_p6, %p280_p5 }
 0x1ce   :  { %288 = shalt.err (!%p285_p7)
}
 0x1cf   :  { %s294_s18 = smov 128   ;;  %s295_s19 = smov 8  }
 0x1d0   :  { %213 = dma.vmem_to_hbm [thread:$0]  %s208_s10, 256, %s380_s5, [#allocation4], %s294_s18, %s294_s18, %s295_s19  }
 0x1d1   :  { %289 = dma.done.wait [#allocation4], 256  }
 0x1d2   :  { %290 = vsyncadd [#allocation4], 4294967040 }
 0x1d3   :  { %217 = vsyncpa [#allocation4], 1 }

</bundles_post_ra>
